<compile_context>
chip_gen: v6e
topology: v6e:2x2x1
jax: 0.10.0
libtpu: 0.0.40
codegen_flags: <defaults>
</compile_context>

<pallas_src>
import functools
import numpy as np
import jax
import jax.numpy as jnp
from jax.experimental import pallas as pl
from jax.experimental.pallas import tpu as pltpu

_EPS = 1e-8
_PENALTY = 1.0e10          # added in-kernel when iou < iou_thresh
_PENALTY_FILTER = 1.0e9    # host-side filter threshold (must stay < _PENALTY)


def _default_bf16_cdist():
    """bf16 cdist only on chips with a bf16-native VPU (v6e / v7x)."""
    try:
        kind = jax.devices()[0].device_kind.lower()
    except Exception:
        return False
    return not any(s in kind for s in ("v2", "v3", "v4", "v5"))


# ----------------------------------------------------------------------------
# Pallas kernel: per (batch, q-tile) block of the transposed cost matrix C^T
# ----------------------------------------------------------------------------
def _cost_kernel(obT_ref, okT_ref, ocT_ref, tb_ref, tk_ref, c_ref,
                 *, w_box, w_kp, w_giou, w_obj, iou_thresh, use_bf16):
    obT = obT_ref[...]   # (6, TQ)  predicted boxes, transposed (cxcyczwhd)
    ocT = ocT_ref[...]   # (1, TQ)  predicted confidence, transposed
    tb = tb_ref[...]     # (M, 6)   target boxes (natural layout)

    # cdist section in bf16 on bf16-native VPUs (v6e/v7x); fp32 otherwise.
    cdt = jnp.bfloat16 if use_bf16 else jnp.float32
    okT_c = okT_ref[...].astype(cdt)   # (K, TQ)
    tk_c = tk_ref[...].astype(cdt)     # (M, K)
    obT_c = obT.astype(cdt)
    tb_c = tb.astype(cdt)

    K = okT_c.shape[0]

    # ---- L1 cdist over keypoints: sum_d |ok[d,q] - tk[m,d]| -> (M, TQ) ------
    # Two partial accumulators break the serial add chain (ILP on 4 VALUs).
    acc0 = jnp.abs(okT_c[0:1, :] - tk_c[:, 0:1])
    acc1 = None
    for d in range(1, K):
        t = jnp.abs(okT_c[d:d + 1, :] - tk_c[:, d:d + 1])
        if d % 2:
            acc1 = t if acc1 is None else acc1 + t
        else:
            acc0 = acc0 + t
    ckp = acc0 if acc1 is None else acc0 + acc1

    # ---- L1 cdist over boxes (6 dims), two partials --------------------------
    bx0 = jnp.abs(obT_c[0:1, :] - tb_c[:, 0:1])
    bx1 = jnp.abs(obT_c[1:2, :] - tb_c[:, 1:2])
    for d in range(2, 6):
        t = jnp.abs(obT_c[d:d + 1, :] - tb_c[:, d:d + 1])
        if d % 2:
            bx1 = bx1 + t
        else:
            bx0 = bx0 + t
    cbx = bx0 + bx1

    # Fused weighted accumulation in fp32; objectness broadcasts over targets.
    C = (w_kp * ckp.astype(jnp.float32)
         + w_box * cbx.astype(jnp.float32)
         + (-w_obj) * ocT)

    # ---- 3D generalized IoU (kept in fp32) ------------------------------------
    # Per-box volumes hoisted: volume is just the size product (w*h*d).
    vol_o = obT[3:4, :] * obT[4:5, :] * obT[5:6, :]   # (1, TQ)
    vol_t = tb[:, 3:4] * tb[:, 4:5] * tb[:, 5:6]      # (M, 1)

    inter = None
    enclose = None
    for k in range(3):
        mn_o = obT[k:k + 1, :] - 0.5 * obT[k + 3:k + 4, :]   # (1, TQ)
        mx_o = obT[k:k + 1, :] + 0.5 * obT[k + 3:k + 4, :]
        mn_t = tb[:, k:k + 1] - 0.5 * tb[:, k + 3:k + 4]     # (M, 1)
        mx_t = tb[:, k:k + 1] + 0.5 * tb[:, k + 3:k + 4]

        iw = jnp.maximum(jnp.minimum(mx_o, mx_t) - jnp.maximum(mn_o, mn_t), 0.0)
        # Enclosing width is always >= 0 for non-negative box sizes (holds for
        # preds, targets, and unit-size padding) -> no clamp needed.
        ew = jnp.maximum(mx_o, mx_t) - jnp.minimum(mn_o, mn_t)
        inter = iw if inter is None else inter * iw
        enclose = ew if enclose is None else enclose * ew

    union = (vol_o + vol_t) - inter
    inv_union = pl.reciprocal(union + _EPS, approx=True)      # EUP slot (free)
    inv_enclose = pl.reciprocal(enclose + _EPS, approx=True)  # EUP slot (free)
    iou = inter * inv_union
    giou = iou - (enclose - union) * inv_enclose
    C = C - w_giou * giou

    if iou_thresh is not None:
        # single select, no extra (M, TQ) temporary
        C = jnp.where(iou < iou_thresh, C + _PENALTY, C)

    c_ref[...] = C


def _pick_q_tile(q_pad, m_pad, batch):
    """Lane-dense q tile: 128-multiple, bounded by a vreg-spill budget
    (~8 live fp32 (m_pad, tq) temporaries kept under ~512 KiB), and split so
    the parallel grid has an even number (>=2) of steps for v7x's two TCs."""
    cap = max(128, (((512 * 1024) // (8 * m_pad * 4)) // 128) * 128)
    tq = 128
    for t in (1024, 512, 256, 128):
        if t <= cap and q_pad % t == 0:
            tq = t
            break

    def total(t):
        return batch * (q_pad // t)

    while tq > 128 and (total(tq) < 2 or total(tq) % 2 == 1):
        nt = tq // 2
        while nt >= 128 and q_pad % nt:
            nt -= 128
        if nt < 128 or nt >= tq:
            break
        tq = nt
    return tq


def _cost_matrix_pallas(obT, okT, ocT, tb_pad, tk_pad,
                        w_box, w_kp, w_giou, w_obj, iou_thresh, use_bf16):
    B, _, Qp = obT.shape
    M_pad = tb_pad.shape[1]
    K = okT.shape[1]
    tq = _pick_q_tile(Qp, M_pad, B)
    grid = (B, Qp // tq)

    kernel = functools.partial(
        _cost_kernel, w_box=float(w_box), w_kp=float(w_kp),
        w_giou=float(w_giou), w_obj=float(w_obj),
        iou_thresh=iou_thresh, use_bf16=bool(use_bf16))

    # TODO(synk): for very ragged batches, per-batch target sizes could be
    # scalar-prefetched instead of padding every batch to M_pad.
    return pl.pallas_call(
        kernel,
        out_shape=jax.ShapeDtypeStruct((B, M_pad, Qp), jnp.float32),
        grid=grid,
        in_specs=[
            pl.BlockSpec((None, 6, tq), lambda b, j: (b, 0, j)),
            pl.BlockSpec((None, K, tq), lambda b, j: (b, 0, j)),
            pl.BlockSpec((None, 1, tq), lambda b, j: (b, 0, j)),
            pl.BlockSpec((None, M_pad, 6), lambda b, j: (b, 0, 0)),
            pl.BlockSpec((None, M_pad, K), lambda b, j: (b, 0, 0)),
        ],
        out_specs=pl.BlockSpec((None, M_pad, tq), lambda b, j: (b, 0, j)),
        compiler_params=pltpu.CompilerParams(
            dimension_semantics=("parallel", "parallel")),
    )(obT, okT, ocT, tb_pad, tk_pad)


# ----------------------------------------------------------------------------
# Plain-jnp path for tiny problems (Pallas launch/padding overhead dominates)
# ----------------------------------------------------------------------------
def _cost_matrix_jnp(obT, okT, ocT, tb_pad, tk_pad,
                     w_box, w_kp, w_giou, w_obj, iou_thresh):
    ob = jnp.swapaxes(obT, 1, 2)   # (B, Q, 6)
    ok = jnp.swapaxes(okT, 1, 2)   # (B, Q, K)
    oc = jnp.swapaxes(ocT, 1, 2)   # (B, Q, 1)

    ckp = jnp.abs(tk_pad[:, :, None, :] - ok[:, None, :, :]).sum(-1)  # (B,M,Q)
    cbx = jnp.abs(tb_pad[:, :, None, :] - ob[:, None, :, :]).sum(-1)
    cob = -oc[:, None, :, 0]

    mn_o = ob[..., :3] - 0.5 * ob[..., 3:]
    mx_o = ob[..., :3] + 0.5 * ob[..., 3:]
    mn_t = tb_pad[..., :3] - 0.5 * tb_pad[..., 3:]
    mx_t = tb_pad[..., :3] + 0.5 * tb_pad[..., 3:]
    vol_o = jnp.prod(ob[..., 3:], -1)
    vol_t = jnp.prod(tb_pad[..., 3:], -1)

    lt = jnp.maximum(mn_t[:, :, None, :], mn_o[:, None, :, :])
    rb = jnp.minimum(mx_t[:, :, None, :], mx_o[:, None, :, :])
    inter = jnp.prod(jnp.maximum(rb - lt, 0.0), -1)
    ltc = jnp.minimum(mn_t[:, :, None, :], mn_o[:, None, :, :])
    rbc = jnp.maximum(mx_t[:, :, None, :], mx_o[:, None, :, :])
    enclose = jnp.prod(jnp.maximum(rbc - ltc, 0.0), -1)

    union = vol_t[:, :, None] + vol_o[:, None, :] - inter
    iou = inter / (union + _EPS)
    giou = iou - (enclose - union) / (enclose + _EPS)

    C = w_kp * ckp + w_box * cbx + w_obj * cob - w_giou * giou
    if iou_thresh is not None:
        C = jnp.where(iou < iou_thresh, C + _PENALTY, C)
    return C


# ----------------------------------------------------------------------------
# Host-side linear sum assignment (scipy if available, exact bitmask DP else)
# ----------------------------------------------------------------------------
def _lsa_bitmask_dp(cost):
    """Exact rectangular assignment via DP over column subsets.

    O(R * 2^C * C); usable only when the smaller dimension is <= ~20."""
    transposed = False
    if cost.shape[0] < cost.shape[1]:
        cost, transposed = cost.T, True
    n_r, n_c = cost.shape
    if n_c > 20:
        raise RuntimeError("scipy unavailable and fallback infeasible for "
                           f"{n_c} columns")
    full = 1 << n_c
    dp = np.full((n_r + 1, full), np.inf)
    dp[0, 0] = 0.0
    choice = np.full((n_r + 1, full), -2, np.int32)
    for r in range(n_r):
        for mask in range(full):
            v = dp[r, mask]
            if not np.isfinite(v):
                continue
            if v < dp[r + 1, mask]:        # row r left unassigned
                dp[r + 1, mask] = v
                choice[r + 1, mask] = -1
            for c in range(n_c):
                bit = 1 << c
                if mask & bit:
                    continue
                nv = v + cost[r, c]
                if nv < dp[r + 1, mask | bit]:
                    dp[r + 1, mask | bit] = nv
                    choice[r + 1, mask | bit] = c
    rows, cols = [], []
    mask = full - 1
    for r in range(n_r, 0, -1):
        c = choice[r, mask]
        if c >= 0:
            rows.append(r - 1)
            cols.append(c)
            mask ^= 1 << c
    ri = np.asarray(rows[::-1], np.int64)
    ci = np.asarray(cols[::-1], np.int64)
    if transposed:
        ri, ci = ci, ri
        order = np.argsort(ri)
        ri, ci = ri[order], ci[order]
    return ri, ci


def _linear_sum_assignment(cost):
    try:
        from scipy.optimize import linear_sum_assignment
        return linear_sum_assignment(cost)
    except ImportError:
        return _lsa_bitmask_dp(np.asarray(cost, np.float64))


# ----------------------------------------------------------------------------
# HungarianMatcher forward (mirrors the PyTorch module semantics)
# ----------------------------------------------------------------------------
def hungarian_matcher_forward(outputs, targets,
                              cost_boxes=1.0, cost_keypoint=1.0,
                              cost_giou=1.0, cost_obj=1.0, iou_thresh=None,
                              use_pallas=None, use_bf16_cdist=None):
    pred_kp = outputs['pred_keypoints']
    B, Q = int(pred_kp.shape[0]), int(pred_kp.shape[1])

    # b q p c -> (b, (p c), q): predictions transposed so q is lane-dense.
    ob = jnp.asarray(outputs['pred_boxes'], jnp.float32).reshape(B, Q, -1)
    ok = jnp.asarray(pred_kp, jnp.float32).reshape(B, Q, -1)
    oc = jnp.asarray(outputs['pred_confidence'], jnp.float32).reshape(B, Q, -1)
    K = ok.shape[-1]

    # Pad Q to a multiple of 128 for lane-dense, unmasked output stores.
    # Padded queries are well-formed (unit-size boxes) and are sliced off
    # host-side, so they never enter the assignment.
    q_pad = max(128, ((Q + 127) // 128) * 128)
    if q_pad > Q:
        npad = q_pad - Q
        pad_box = jnp.concatenate(
            [jnp.full((B, npad, 3), 0.5, jnp.float32),
             jnp.ones((B, npad, 3), jnp.float32)], axis=-1)
        ob = jnp.concatenate([ob, pad_box], axis=1)
        ok = jnp.concatenate([ok, jnp.zeros((B, npad, K), jnp.float32)], axis=1)
        oc = jnp.concatenate([oc, jnp.zeros((B, npad, 1), jnp.float32)], axis=1)

    obT = jnp.swapaxes(ob, 1, 2)
    okT = jnp.swapaxes(ok, 1, 2)
    ocT = jnp.swapaxes(oc, 1, 2)

    sizes = [int(v.shape[0]) for v in targets['boxes']]
    m_max = max(sizes)
    m_pad = max(8, ((m_max + 7) // 8) * 8)

    # Pad targets per batch; dummy slots get unit-size boxes (no degenerate
    # volumes) and are sliced away host-side, so they never affect matching.
    tb_pad = np.zeros((B, m_pad, 6), np.float32)
    tb_pad[:, :, 3:] = 1.0
    tk_pad = np.zeros((B, m_pad, K), np.float32)
    for i, (bx, kp) in enumerate(zip(targets['boxes'], targets['keypoints'])):
        n = bx.shape[0]
        tb_pad[i, :n] = np.asarray(bx, np.float32).reshape(n, -1)
        tk_pad[i, :n] = np.asarray(kp, np.float32).reshape(n, -1)
    tb_pad = jnp.asarray(tb_pad)
    tk_pad = jnp.asarray(tk_pad)

    if use_bf16_cdist is None:
        use_bf16_cdist = _default_bf16_cdist()
    if use_pallas is None:
        use_pallas = (B * q_pad * m_pad) >= 32768   # toy sizes: plain XLA wins

    if use_pallas:
        CT = _cost_matrix_pallas(obT, okT, ocT, tb_pad, tk_pad,
                                 cost_boxes, cost_keypoint, cost_giou,
                                 cost_obj, iou_thresh, use_bf16_cdist)
    else:
        CT = _cost_matrix_jnp(obT, okT, ocT, tb_pad, tk_pad,
                              cost_boxes, cost_keypoint, cost_giou,
                              cost_obj, iou_thresh)
    CT_np = np.asarray(jax.block_until_ready(CT))   # (B, m_pad, q_pad), C^T

    indices, cost_mats = [], []
    for i, sz in enumerate(sizes):
        cm = CT_np[i, :sz, :Q].T         # (Q, sz): rows=queries, cols=targets
        ri, ci = _linear_sum_assignment(cm)
        sel = cm[ri, ci] < _PENALTY_FILTER
        indices.append((ri[sel].astype(np.int64), ci[sel].astype(np.int64)))
        cost_mats.append(cm)
    return indices, cost_mats


# ----------------------------------------------------------------------------
# Pure-numpy reference for one batch element (sanity check)
# ----------------------------------------------------------------------------
def _cost_matrix_ref_np(ob, ok, oc, tb, tk, w_box, w_kp, w_giou, w_obj):
    ob, ok, oc, tb, tk = map(lambda a: np.asarray(a, np.float64),
                             (ob, ok, oc, tb, tk))
    cost_kp = np.abs(ok[:, None, :] - tk[None, :, :]).sum(-1)
    cost_bx = np.abs(ob[:, None, :] - tb[None, :, :]).sum(-1)

    def to_xyzxyz(b):
        c, s = b[:, :3], b[:, 3:]
        return np.concatenate([c - 0.5 * s, c + 0.5 * s], axis=-1)

    b1, b2 = to_xyzxyz(ob), to_xyzxyz(tb)
    v1 = np.prod(b1[:, 3:] - b1[:, :3], axis=-1)
    v2 = np.prod(b2[:, 3:] - b2[:, :3], axis=-1)
    lt = np.maximum(b1[:, None, :3], b2[None, :, :3])
    rb = np.minimum(b1[:, None, 3:], b2[None, :, 3:])
    inter = np.prod(np.clip(rb - lt, 0, None), axis=-1)
    union = v1[:, None] + v2[None, :] - inter
    iou = inter / (union + _EPS)
    ltc = np.minimum(b1[:, None, :3], b2[None, :, :3])
    rbc = np.maximum(b1[:, None, 3:], b2[None, :, 3:])
    vc = np.prod(np.clip(rbc - ltc, 0, None), axis=-1)
    giou = iou - (vc - union) / (vc + _EPS)
    return (w_kp * cost_kp + w_giou * (-giou)
            + w_obj * (-oc) + w_box * cost_bx)


if __name__ == "__main__":
    key = jax.random.PRNGKey(0)
    B, Q = 2, 8                 # batch, num_queries
    P_KP, C3 = 4, 3             # keypoints per query, 3D coords

    ks = jax.random.split(key, 8)
    pred_centers = jax.random.uniform(ks[0], (B, Q, 1, C3), minval=0.2, maxval=0.8)
    pred_sizes = jax.random.uniform(ks[1], (B, Q, 1, C3), minval=0.1, maxval=0.4)
    pred_boxes = jnp.concatenate([pred_centers, pred_sizes], axis=2)
    pred_keypoints = jax.random.uniform(ks[2], (B, Q, P_KP, C3))
    pred_confidence = jax.random.uniform(ks[3], (B, Q, 1))

    outputs = {
        'pred_boxes': pred_boxes.astype(jnp.float32),
        'pred_keypoints': pred_keypoints.astype(jnp.float32),
        'pred_confidence': pred_confidence.astype(jnp.float32),
    }

    # Targets: ragged list per batch element (numpy, as in the reference)
    sizes = [3, 5]
    tgt_boxes_list, tgt_kpts_list = [], []
    kidx = 4
    for n in sizes:
        c = np.asarray(jax.random.uniform(ks[kidx], (n, 1, C3),
                                          minval=0.2, maxval=0.8))
        s = np.asarray(jax.random.uniform(ks[kidx + 1], (n, 1, C3),
                                          minval=0.1, maxval=0.4))
        tgt_boxes_list.append(np.concatenate([c, s], axis=1).astype(np.float32))
        tgt_kpts_list.append(np.asarray(
            jax.random.uniform(ks[kidx], (n, P_KP, C3))).astype(np.float32))
        kidx += 2
    targets = {'boxes': tgt_boxes_list, 'keypoints': tgt_kpts_list}

    # Force the Pallas path even at demo size so the kernel is exercised.
    # fp32 cdist run: used for the strict correctness check and the matching.
    indices, cost_mats = hungarian_matcher_forward(outputs, targets,
                                                   use_pallas=True,
                                                   use_bf16_cdist=False)

    # Sanity-check the Pallas cost matrices against a numpy reference.
    ob = np.asarray(outputs['pred_boxes']).reshape(B, Q, -1)
    ok = np.asarray(outputs['pred_keypoints']).reshape(B, Q, -1)
    oc = np.asarray(outputs['pred_confidence']).reshape(B, Q, -1)
    for i, sz in enumerate(sizes):
        tb = tgt_boxes_list[i].reshape(sz, -1)
        tk = tgt_kpts_list[i].reshape(sz, -1)
        C_ref = _cost_matrix_ref_np(ob[i], ok[i], oc[i], tb, tk,
                                    1.0, 1.0, 1.0, 1.0)
        # slightly loose tolerance: GIoU uses EUP approx reciprocals
        np.testing.assert_allclose(cost_mats[i], C_ref, rtol=1e-2, atol=1e-2)

    # Exercise the bf16-cdist path on chips with a bf16-native VPU (v6e/v7x);
    # check it stays close to the fp32 Pallas result.
    if _default_bf16_cdist():
        _, cost_mats_bf16 = hungarian_matcher_forward(outputs, targets,
                                                      use_pallas=True,
                                                      use_bf16_cdist=True)
        for cm32, cmbf in zip(cost_mats, cost_mats_bf16):
            np.testing.assert_allclose(cmbf, cm32, rtol=6e-2, atol=6e-2)

    # Basic shape/validity checks on the matching result.
    assert len(indices) == B
    for (ri, ci), n in zip(indices, sizes):
        assert ri.dtype == np.int64 and ci.dtype == np.int64
        assert len(ri) == len(ci) <= n
        assert len(np.unique(ci)) == len(ci)
        assert len(np.unique(ri)) == len(ri)

    print("KERNEL_OK")
</pallas_src>

<mosaic_0001>
module attributes {stable_mosaic.version = 11 : i64} {
  func.func @_cost_kernel(%arg0: i32, %arg1: i32, %arg2: memref<1x6x128xf32, #tpu.memory_space<vmem>>, %arg3: memref<1x12x128xf32, #tpu.memory_space<vmem>>, %arg4: memref<1x1x128xf32, #tpu.memory_space<vmem>>, %arg5: memref<1x8x6xf32, #tpu.memory_space<vmem>>, %arg6: memref<1x8x12xf32, #tpu.memory_space<vmem>>, %arg7: memref<1x8x128xf32, #tpu.memory_space<vmem>>) attributes {dimension_semantics = [#tpu.dimension_semantics<parallel>, #tpu.dimension_semantics<parallel>], iteration_bounds = array<i64: 2, 1>, scalar_prefetch = 0 : i64, scratch_operands = 0 : i64, tpu.core_type = #tpu.core_type<tc>, window_params = [{transform_indices = @transform_0, window_bounds = array<i64: 1, 6, 128>}, {transform_indices = @transform_1, window_bounds = array<i64: 1, 12, 128>}, {transform_indices = @transform_2, window_bounds = array<i64: 1, 1, 128>}, {transform_indices = @transform_3, window_bounds = array<i64: 1, 8, 6>}, {transform_indices = @transform_4, window_bounds = array<i64: 1, 8, 12>}, {transform_indices = @transform_5, window_bounds = array<i64: 1, 8, 128>}]} {
    %c0 = arith.constant 0 : index
    %c0_0 = arith.constant 0 : index
    %c0_1 = arith.constant 0 : index
    %0 = vector.load %arg2[%c0, %c0_0, %c0_1] : memref<1x6x128xf32, #tpu.memory_space<vmem>>, vector<1x6x128xf32>
    %1 = vector.shape_cast %0 : vector<1x6x128xf32> to vector<6x128xf32>
    %c0_2 = arith.constant 0 : index
    %c0_3 = arith.constant 0 : index
    %c0_4 = arith.constant 0 : index
    %2 = vector.load %arg4[%c0_2, %c0_3, %c0_4] : memref<1x1x128xf32, #tpu.memory_space<vmem>>, vector<1x1x128xf32>
    %3 = vector.shape_cast %2 : vector<1x1x128xf32> to vector<1x128xf32>
    %c0_5 = arith.constant 0 : index
    %c0_6 = arith.constant 0 : index
    %c0_7 = arith.constant 0 : index
    %4 = vector.load %arg5[%c0_5, %c0_6, %c0_7] : memref<1x8x6xf32, #tpu.memory_space<vmem>>, vector<1x8x6xf32>
    %5 = vector.shape_cast %4 : vector<1x8x6xf32> to vector<8x6xf32>
    %c0_8 = arith.constant 0 : index
    %c0_9 = arith.constant 0 : index
    %c0_10 = arith.constant 0 : index
    %6 = vector.load %arg3[%c0_8, %c0_9, %c0_10] : memref<1x12x128xf32, #tpu.memory_space<vmem>>, vector<1x12x128xf32>
    %7 = vector.shape_cast %6 : vector<1x12x128xf32> to vector<12x128xf32>
    %c0_11 = arith.constant 0 : index
    %c0_12 = arith.constant 0 : index
    %c0_13 = arith.constant 0 : index
    %8 = vector.load %arg6[%c0_11, %c0_12, %c0_13] : memref<1x8x12xf32, #tpu.memory_space<vmem>>, vector<1x8x12xf32>
    %9 = vector.shape_cast %8 : vector<1x8x12xf32> to vector<8x12xf32>
    %10 = vector.extract_strided_slice %7 {offsets = [0, 0], sizes = [1, 128], strides = [1, 1]} : vector<12x128xf32> to vector<1x128xf32>
    %11 = vector.extract_strided_slice %9 {offsets = [0, 0], sizes = [8, 1], strides = [1, 1]} : vector<8x12xf32> to vector<8x1xf32>
    %12 = vector.broadcast %10 : vector<1x128xf32> to vector<8x128xf32>
    %13 = vector.broadcast %11 : vector<8x1xf32> to vector<8x128xf32>
    %14 = arith.subf %12, %13 : vector<8x128xf32>
    %15 = math.absf %14 : vector<8x128xf32>
    %16 = vector.extract_strided_slice %7 {offsets = [1, 0], sizes = [1, 128], strides = [1, 1]} : vector<12x128xf32> to vector<1x128xf32>
    %17 = vector.extract_strided_slice %9 {offsets = [0, 1], sizes = [8, 1], strides = [1, 1]} : vector<8x12xf32> to vector<8x1xf32>
    %18 = vector.broadcast %16 : vector<1x128xf32> to vector<8x128xf32>
    %19 = vector.broadcast %17 : vector<8x1xf32> to vector<8x128xf32>
    %20 = arith.subf %18, %19 : vector<8x128xf32>
    %21 = math.absf %20 : vector<8x128xf32>
    %22 = vector.extract_strided_slice %7 {offsets = [2, 0], sizes = [1, 128], strides = [1, 1]} : vector<12x128xf32> to vector<1x128xf32>
    %23 = vector.extract_strided_slice %9 {offsets = [0, 2], sizes = [8, 1], strides = [1, 1]} : vector<8x12xf32> to vector<8x1xf32>
    %24 = vector.broadcast %22 : vector<1x128xf32> to vector<8x128xf32>
    %25 = vector.broadcast %23 : vector<8x1xf32> to vector<8x128xf32>
    %26 = arith.subf %24, %25 : vector<8x128xf32>
    %27 = math.absf %26 : vector<8x128xf32>
    %28 = arith.addf %15, %27 : vector<8x128xf32>
    %29 = vector.extract_strided_slice %7 {offsets = [3, 0], sizes = [1, 128], strides = [1, 1]} : vector<12x128xf32> to vector<1x128xf32>
    %30 = vector.extract_strided_slice %9 {offsets = [0, 3], sizes = [8, 1], strides = [1, 1]} : vector<8x12xf32> to vector<8x1xf32>
    %31 = vector.broadcast %29 : vector<1x128xf32> to vector<8x128xf32>
    %32 = vector.broadcast %30 : vector<8x1xf32> to vector<8x128xf32>
    %33 = arith.subf %31, %32 : vector<8x128xf32>
    %34 = math.absf %33 : vector<8x128xf32>
    %35 = arith.addf %21, %34 : vector<8x128xf32>
    %36 = vector.extract_strided_slice %7 {offsets = [4, 0], sizes = [1, 128], strides = [1, 1]} : vector<12x128xf32> to vector<1x128xf32>
    %37 = vector.extract_strided_slice %9 {offsets = [0, 4], sizes = [8, 1], strides = [1, 1]} : vector<8x12xf32> to vector<8x1xf32>
    %38 = vector.broadcast %36 : vector<1x128xf32> to vector<8x128xf32>
    %39 = vector.broadcast %37 : vector<8x1xf32> to vector<8x128xf32>
    %40 = arith.subf %38, %39 : vector<8x128xf32>
    %41 = math.absf %40 : vector<8x128xf32>
    %42 = arith.addf %28, %41 : vector<8x128xf32>
    %43 = vector.extract_strided_slice %7 {offsets = [5, 0], sizes = [1, 128], strides = [1, 1]} : vector<12x128xf32> to vector<1x128xf32>
    %44 = vector.extract_strided_slice %9 {offsets = [0, 5], sizes = [8, 1], strides = [1, 1]} : vector<8x12xf32> to vector<8x1xf32>
    %45 = vector.broadcast %43 : vector<1x128xf32> to vector<8x128xf32>
    %46 = vector.broadcast %44 : vector<8x1xf32> to vector<8x128xf32>
    %47 = arith.subf %45, %46 : vector<8x128xf32>
    %48 = math.absf %47 : vector<8x128xf32>
    %49 = arith.addf %35, %48 : vector<8x128xf32>
    %50 = vector.extract_strided_slice %7 {offsets = [6, 0], sizes = [1, 128], strides = [1, 1]} : vector<12x128xf32> to vector<1x128xf32>
    %51 = vector.extract_strided_slice %9 {offsets = [0, 6], sizes = [8, 1], strides = [1, 1]} : vector<8x12xf32> to vector<8x1xf32>
    %52 = vector.broadcast %50 : vector<1x128xf32> to vector<8x128xf32>
    %53 = vector.broadcast %51 : vector<8x1xf32> to vector<8x128xf32>
    %54 = arith.subf %52, %53 : vector<8x128xf32>
    %55 = math.absf %54 : vector<8x128xf32>
    %56 = arith.addf %42, %55 : vector<8x128xf32>
    %57 = vector.extract_strided_slice %7 {offsets = [7, 0], sizes = [1, 128], strides = [1, 1]} : vector<12x128xf32> to vector<1x128xf32>
    %58 = vector.extract_strided_slice %9 {offsets = [0, 7], sizes = [8, 1], strides = [1, 1]} : vector<8x12xf32> to vector<8x1xf32>
    %59 = vector.broadcast %57 : vector<1x128xf32> to vector<8x128xf32>
    %60 = vector.broadcast %58 : vector<8x1xf32> to vector<8x128xf32>
    %61 = arith.subf %59, %60 : vector<8x128xf32>
    %62 = math.absf %61 : vector<8x128xf32>
    %63 = arith.addf %49, %62 : vector<8x128xf32>
    %64 = vector.extract_strided_slice %7 {offsets = [8, 0], sizes = [1, 128], strides = [1, 1]} : vector<12x128xf32> to vector<1x128xf32>
    %65 = vector.extract_strided_slice %9 {offsets = [0, 8], sizes = [8, 1], strides = [1, 1]} : vector<8x12xf32> to vector<8x1xf32>
    %66 = vector.broadcast %64 : vector<1x128xf32> to vector<8x128xf32>
    %67 = vector.broadcast %65 : vector<8x1xf32> to vector<8x128xf32>
    %68 = arith.subf %66, %67 : vector<8x128xf32>
    %69 = math.absf %68 : vector<8x128xf32>
    %70 = arith.addf %56, %69 : vector<8x128xf32>
    %71 = vector.extract_strided_slice %7 {offsets = [9, 0], sizes = [1, 128], strides = [1, 1]} : vector<12x128xf32> to vector<1x128xf32>
    %72 = vector.extract_strided_slice %9 {offsets = [0, 9], sizes = [8, 1], strides = [1, 1]} : vector<8x12xf32> to vector<8x1xf32>
    %73 = vector.broadcast %71 : vector<1x128xf32> to vector<8x128xf32>
    %74 = vector.broadcast %72 : vector<8x1xf32> to vector<8x128xf32>
    %75 = arith.subf %73, %74 : vector<8x128xf32>
    %76 = math.absf %75 : vector<8x128xf32>
    %77 = arith.addf %63, %76 : vector<8x128xf32>
    %78 = vector.extract_strided_slice %7 {offsets = [10, 0], sizes = [1, 128], strides = [1, 1]} : vector<12x128xf32> to vector<1x128xf32>
    %79 = vector.extract_strided_slice %9 {offsets = [0, 10], sizes = [8, 1], strides = [1, 1]} : vector<8x12xf32> to vector<8x1xf32>
    %80 = vector.broadcast %78 : vector<1x128xf32> to vector<8x128xf32>
    %81 = vector.broadcast %79 : vector<8x1xf32> to vector<8x128xf32>
    %82 = arith.subf %80, %81 : vector<8x128xf32>
    %83 = math.absf %82 : vector<8x128xf32>
    %84 = arith.addf %70, %83 : vector<8x128xf32>
    %85 = vector.extract_strided_slice %7 {offsets = [11, 0], sizes = [1, 128], strides = [1, 1]} : vector<12x128xf32> to vector<1x128xf32>
    %86 = vector.extract_strided_slice %9 {offsets = [0, 11], sizes = [8, 1], strides = [1, 1]} : vector<8x12xf32> to vector<8x1xf32>
    %87 = vector.broadcast %85 : vector<1x128xf32> to vector<8x128xf32>
    %88 = vector.broadcast %86 : vector<8x1xf32> to vector<8x128xf32>
    %89 = arith.subf %87, %88 : vector<8x128xf32>
    %90 = math.absf %89 : vector<8x128xf32>
    %91 = arith.addf %77, %90 : vector<8x128xf32>
    %92 = arith.addf %84, %91 : vector<8x128xf32>
    %93 = vector.extract_strided_slice %1 {offsets = [0, 0], sizes = [1, 128], strides = [1, 1]} : vector<6x128xf32> to vector<1x128xf32>
    %94 = vector.extract_strided_slice %5 {offsets = [0, 0], sizes = [8, 1], strides = [1, 1]} : vector<8x6xf32> to vector<8x1xf32>
    %95 = vector.broadcast %93 : vector<1x128xf32> to vector<8x128xf32>
    %96 = vector.broadcast %94 : vector<8x1xf32> to vector<8x128xf32>
    %97 = arith.subf %95, %96 : vector<8x128xf32>
    %98 = math.absf %97 : vector<8x128xf32>
    %99 = vector.extract_strided_slice %1 {offsets = [1, 0], sizes = [1, 128], strides = [1, 1]} : vector<6x128xf32> to vector<1x128xf32>
    %100 = vector.extract_strided_slice %5 {offsets = [0, 1], sizes = [8, 1], strides = [1, 1]} : vector<8x6xf32> to vector<8x1xf32>
    %101 = vector.broadcast %99 : vector<1x128xf32> to vector<8x128xf32>
    %102 = vector.broadcast %100 : vector<8x1xf32> to vector<8x128xf32>
    %103 = arith.subf %101, %102 : vector<8x128xf32>
    %104 = math.absf %103 : vector<8x128xf32>
    %105 = vector.extract_strided_slice %1 {offsets = [2, 0], sizes = [1, 128], strides = [1, 1]} : vector<6x128xf32> to vector<1x128xf32>
    %106 = vector.extract_strided_slice %5 {offsets = [0, 2], sizes = [8, 1], strides = [1, 1]} : vector<8x6xf32> to vector<8x1xf32>
    %107 = vector.broadcast %105 : vector<1x128xf32> to vector<8x128xf32>
    %108 = vector.broadcast %106 : vector<8x1xf32> to vector<8x128xf32>
    %109 = arith.subf %107, %108 : vector<8x128xf32>
    %110 = math.absf %109 : vector<8x128xf32>
    %111 = arith.addf %98, %110 : vector<8x128xf32>
    %112 = vector.extract_strided_slice %1 {offsets = [3, 0], sizes = [1, 128], strides = [1, 1]} : vector<6x128xf32> to vector<1x128xf32>
    %113 = vector.extract_strided_slice %5 {offsets = [0, 3], sizes = [8, 1], strides = [1, 1]} : vector<8x6xf32> to vector<8x1xf32>
    %114 = vector.broadcast %112 : vector<1x128xf32> to vector<8x128xf32>
    %115 = vector.broadcast %113 : vector<8x1xf32> to vector<8x128xf32>
    %116 = arith.subf %114, %115 : vector<8x128xf32>
    %117 = math.absf %116 : vector<8x128xf32>
    %118 = arith.addf %104, %117 : vector<8x128xf32>
    %119 = vector.extract_strided_slice %1 {offsets = [4, 0], sizes = [1, 128], strides = [1, 1]} : vector<6x128xf32> to vector<1x128xf32>
    %120 = vector.extract_strided_slice %5 {offsets = [0, 4], sizes = [8, 1], strides = [1, 1]} : vector<8x6xf32> to vector<8x1xf32>
    %121 = vector.broadcast %119 : vector<1x128xf32> to vector<8x128xf32>
    %122 = vector.broadcast %120 : vector<8x1xf32> to vector<8x128xf32>
    %123 = arith.subf %121, %122 : vector<8x128xf32>
    %124 = math.absf %123 : vector<8x128xf32>
    %125 = arith.addf %111, %124 : vector<8x128xf32>
    %126 = vector.extract_strided_slice %1 {offsets = [5, 0], sizes = [1, 128], strides = [1, 1]} : vector<6x128xf32> to vector<1x128xf32>
    %127 = vector.extract_strided_slice %5 {offsets = [0, 5], sizes = [8, 1], strides = [1, 1]} : vector<8x6xf32> to vector<8x1xf32>
    %128 = vector.broadcast %126 : vector<1x128xf32> to vector<8x128xf32>
    %129 = vector.broadcast %127 : vector<8x1xf32> to vector<8x128xf32>
    %130 = arith.subf %128, %129 : vector<8x128xf32>
    %131 = math.absf %130 : vector<8x128xf32>
    %132 = arith.addf %118, %131 : vector<8x128xf32>
    %133 = arith.addf %125, %132 : vector<8x128xf32>
    %cst = arith.constant 1.000000e+00 : f32
    %134 = vector.broadcast %cst : f32 to vector<8x128xf32>
    %135 = arith.mulf %134, %92 : vector<8x128xf32>
    %cst_14 = arith.constant 1.000000e+00 : f32
    %136 = vector.broadcast %cst_14 : f32 to vector<8x128xf32>
    %137 = arith.mulf %136, %133 : vector<8x128xf32>
    %138 = arith.addf %135, %137 : vector<8x128xf32>
    %cst_15 = arith.constant -1.000000e+00 : f32
    %139 = vector.broadcast %cst_15 : f32 to vector<1x128xf32>
    %140 = arith.mulf %139, %3 : vector<1x128xf32>
    %141 = vector.broadcast %140 : vector<1x128xf32> to vector<8x128xf32>
    %142 = arith.addf %138, %141 : vector<8x128xf32>
    %143 = vector.extract_strided_slice %1 {offsets = [3, 0], sizes = [1, 128], strides = [1, 1]} : vector<6x128xf32> to vector<1x128xf32>
    %144 = vector.extract_strided_slice %1 {offsets = [4, 0], sizes = [1, 128], strides = [1, 1]} : vector<6x128xf32> to vector<1x128xf32>
    %145 = arith.mulf %143, %144 : vector<1x128xf32>
    %146 = vector.extract_strided_slice %1 {offsets = [5, 0], sizes = [1, 128], strides = [1, 1]} : vector<6x128xf32> to vector<1x128xf32>
    %147 = arith.mulf %145, %146 : vector<1x128xf32>
    %148 = vector.extract_strided_slice %5 {offsets = [0, 3], sizes = [8, 1], strides = [1, 1]} : vector<8x6xf32> to vector<8x1xf32>
    %149 = vector.extract_strided_slice %5 {offsets = [0, 4], sizes = [8, 1], strides = [1, 1]} : vector<8x6xf32> to vector<8x1xf32>
    %150 = arith.mulf %148, %149 : vector<8x1xf32>
    %151 = vector.extract_strided_slice %5 {offsets = [0, 5], sizes = [8, 1], strides = [1, 1]} : vector<8x6xf32> to vector<8x1xf32>
    %152 = arith.mulf %150, %151 : vector<8x1xf32>
    %153 = vector.extract_strided_slice %1 {offsets = [0, 0], sizes = [1, 128], strides = [1, 1]} : vector<6x128xf32> to vector<1x128xf32>
    %154 = vector.extract_strided_slice %1 {offsets = [3, 0], sizes = [1, 128], strides = [1, 1]} : vector<6x128xf32> to vector<1x128xf32>
    %cst_16 = arith.constant 5.000000e-01 : f32
    %155 = vector.broadcast %cst_16 : f32 to vector<1x128xf32>
    %156 = arith.mulf %155, %154 : vector<1x128xf32>
    %157 = arith.subf %153, %156 : vector<1x128xf32>
    %158 = vector.extract_strided_slice %1 {offsets = [0, 0], sizes = [1, 128], strides = [1, 1]} : vector<6x128xf32> to vector<1x128xf32>
    %159 = vector.extract_strided_slice %1 {offsets = [3, 0], sizes = [1, 128], strides = [1, 1]} : vector<6x128xf32> to vector<1x128xf32>
    %cst_17 = arith.constant 5.000000e-01 : f32
    %160 = vector.broadcast %cst_17 : f32 to vector<1x128xf32>
    %161 = arith.mulf %160, %159 : vector<1x128xf32>
    %162 = arith.addf %158, %161 : vector<1x128xf32>
    %163 = vector.extract_strided_slice %5 {offsets = [0, 0], sizes = [8, 1], strides = [1, 1]} : vector<8x6xf32> to vector<8x1xf32>
    %164 = vector.extract_strided_slice %5 {offsets = [0, 3], sizes = [8, 1], strides = [1, 1]} : vector<8x6xf32> to vector<8x1xf32>
    %cst_18 = arith.constant 5.000000e-01 : f32
    %165 = vector.broadcast %cst_18 : f32 to vector<8x1xf32>
    %166 = arith.mulf %165, %164 : vector<8x1xf32>
    %167 = arith.subf %163, %166 : vector<8x1xf32>
    %168 = vector.extract_strided_slice %5 {offsets = [0, 0], sizes = [8, 1], strides = [1, 1]} : vector<8x6xf32> to vector<8x1xf32>
    %169 = vector.extract_strided_slice %5 {offsets = [0, 3], sizes = [8, 1], strides = [1, 1]} : vector<8x6xf32> to vector<8x1xf32>
    %cst_19 = arith.constant 5.000000e-01 : f32
    %170 = vector.broadcast %cst_19 : f32 to vector<8x1xf32>
    %171 = arith.mulf %170, %169 : vector<8x1xf32>
    %172 = arith.addf %168, %171 : vector<8x1xf32>
    %173 = vector.broadcast %162 : vector<1x128xf32> to vector<8x128xf32>
    %174 = vector.broadcast %172 : vector<8x1xf32> to vector<8x128xf32>
    %175 = arith.minimumf %173, %174 : vector<8x128xf32>
    %176 = vector.broadcast %157 : vector<1x128xf32> to vector<8x128xf32>
    %177 = vector.broadcast %167 : vector<8x1xf32> to vector<8x128xf32>
    %178 = arith.maximumf %176, %177 : vector<8x128xf32>
    %179 = arith.subf %175, %178 : vector<8x128xf32>
    %cst_20 = arith.constant 0.000000e+00 : f32
    %180 = vector.broadcast %cst_20 : f32 to vector<8x128xf32>
    %181 = arith.maximumf %179, %180 : vector<8x128xf32>
    %182 = vector.broadcast %162 : vector<1x128xf32> to vector<8x128xf32>
    %183 = vector.broadcast %172 : vector<8x1xf32> to vector<8x128xf32>
    %184 = arith.maximumf %182, %183 : vector<8x128xf32>
    %185 = vector.broadcast %157 : vector<1x128xf32> to vector<8x128xf32>
    %186 = vector.broadcast %167 : vector<8x1xf32> to vector<8x128xf32>
    %187 = arith.minimumf %185, %186 : vector<8x128xf32>
    %188 = arith.subf %184, %187 : vector<8x128xf32>
    %189 = vector.extract_strided_slice %1 {offsets = [1, 0], sizes = [1, 128], strides = [1, 1]} : vector<6x128xf32> to vector<1x128xf32>
    %190 = vector.extract_strided_slice %1 {offsets = [4, 0], sizes = [1, 128], strides = [1, 1]} : vector<6x128xf32> to vector<1x128xf32>
    %cst_21 = arith.constant 5.000000e-01 : f32
    %191 = vector.broadcast %cst_21 : f32 to vector<1x128xf32>
    %192 = arith.mulf %191, %190 : vector<1x128xf32>
    %193 = arith.subf %189, %192 : vector<1x128xf32>
    %194 = vector.extract_strided_slice %1 {offsets = [1, 0], sizes = [1, 128], strides = [1, 1]} : vector<6x128xf32> to vector<1x128xf32>
    %195 = vector.extract_strided_slice %1 {offsets = [4, 0], sizes = [1, 128], strides = [1, 1]} : vector<6x128xf32> to vector<1x128xf32>
    %cst_22 = arith.constant 5.000000e-01 : f32
    %196 = vector.broadcast %cst_22 : f32 to vector<1x128xf32>
    %197 = arith.mulf %196, %195 : vector<1x128xf32>
    %198 = arith.addf %194, %197 : vector<1x128xf32>
    %199 = vector.extract_strided_slice %5 {offsets = [0, 1], sizes = [8, 1], strides = [1, 1]} : vector<8x6xf32> to vector<8x1xf32>
    %200 = vector.extract_strided_slice %5 {offsets = [0, 4], sizes = [8, 1], strides = [1, 1]} : vector<8x6xf32> to vector<8x1xf32>
    %cst_23 = arith.constant 5.000000e-01 : f32
    %201 = vector.broadcast %cst_23 : f32 to vector<8x1xf32>
    %202 = arith.mulf %201, %200 : vector<8x1xf32>
    %203 = arith.subf %199, %202 : vector<8x1xf32>
    %204 = vector.extract_strided_slice %5 {offsets = [0, 1], sizes = [8, 1], strides = [1, 1]} : vector<8x6xf32> to vector<8x1xf32>
    %205 = vector.extract_strided_slice %5 {offsets = [0, 4], sizes = [8, 1], strides = [1, 1]} : vector<8x6xf32> to vector<8x1xf32>
    %cst_24 = arith.constant 5.000000e-01 : f32
    %206 = vector.broadcast %cst_24 : f32 to vector<8x1xf32>
    %207 = arith.mulf %206, %205 : vector<8x1xf32>
    %208 = arith.addf %204, %207 : vector<8x1xf32>
    %209 = vector.broadcast %198 : vector<1x128xf32> to vector<8x128xf32>
    %210 = vector.broadcast %208 : vector<8x1xf32> to vector<8x128xf32>
    %211 = arith.minimumf %209, %210 : vector<8x128xf32>
    %212 = vector.broadcast %193 : vector<1x128xf32> to vector<8x128xf32>
    %213 = vector.broadcast %203 : vector<8x1xf32> to vector<8x128xf32>
    %214 = arith.maximumf %212, %213 : vector<8x128xf32>
    %215 = arith.subf %211, %214 : vector<8x128xf32>
    %cst_25 = arith.constant 0.000000e+00 : f32
    %216 = vector.broadcast %cst_25 : f32 to vector<8x128xf32>
    %217 = arith.maximumf %215, %216 : vector<8x128xf32>
    %218 = vector.broadcast %198 : vector<1x128xf32> to vector<8x128xf32>
    %219 = vector.broadcast %208 : vector<8x1xf32> to vector<8x128xf32>
    %220 = arith.maximumf %218, %219 : vector<8x128xf32>
    %221 = vector.broadcast %193 : vector<1x128xf32> to vector<8x128xf32>
    %222 = vector.broadcast %203 : vector<8x1xf32> to vector<8x128xf32>
    %223 = arith.minimumf %221, %222 : vector<8x128xf32>
    %224 = arith.subf %220, %223 : vector<8x128xf32>
    %225 = arith.mulf %181, %217 : vector<8x128xf32>
    %226 = arith.mulf %188, %224 : vector<8x128xf32>
    %227 = vector.extract_strided_slice %1 {offsets = [2, 0], sizes = [1, 128], strides = [1, 1]} : vector<6x128xf32> to vector<1x128xf32>
    %228 = vector.extract_strided_slice %1 {offsets = [5, 0], sizes = [1, 128], strides = [1, 1]} : vector<6x128xf32> to vector<1x128xf32>
    %cst_26 = arith.constant 5.000000e-01 : f32
    %229 = vector.broadcast %cst_26 : f32 to vector<1x128xf32>
    %230 = arith.mulf %229, %228 : vector<1x128xf32>
    %231 = arith.subf %227, %230 : vector<1x128xf32>
    %232 = vector.extract_strided_slice %1 {offsets = [2, 0], sizes = [1, 128], strides = [1, 1]} : vector<6x128xf32> to vector<1x128xf32>
    %233 = vector.extract_strided_slice %1 {offsets = [5, 0], sizes = [1, 128], strides = [1, 1]} : vector<6x128xf32> to vector<1x128xf32>
    %cst_27 = arith.constant 5.000000e-01 : f32
    %234 = vector.broadcast %cst_27 : f32 to vector<1x128xf32>
    %235 = arith.mulf %234, %233 : vector<1x128xf32>
    %236 = arith.addf %232, %235 : vector<1x128xf32>
    %237 = vector.extract_strided_slice %5 {offsets = [0, 2], sizes = [8, 1], strides = [1, 1]} : vector<8x6xf32> to vector<8x1xf32>
    %238 = vector.extract_strided_slice %5 {offsets = [0, 5], sizes = [8, 1], strides = [1, 1]} : vector<8x6xf32> to vector<8x1xf32>
    %cst_28 = arith.constant 5.000000e-01 : f32
    %239 = vector.broadcast %cst_28 : f32 to vector<8x1xf32>
    %240 = arith.mulf %239, %238 : vector<8x1xf32>
    %241 = arith.subf %237, %240 : vector<8x1xf32>
    %242 = vector.extract_strided_slice %5 {offsets = [0, 2], sizes = [8, 1], strides = [1, 1]} : vector<8x6xf32> to vector<8x1xf32>
    %243 = vector.extract_strided_slice %5 {offsets = [0, 5], sizes = [8, 1], strides = [1, 1]} : vector<8x6xf32> to vector<8x1xf32>
    %cst_29 = arith.constant 5.000000e-01 : f32
    %244 = vector.broadcast %cst_29 : f32 to vector<8x1xf32>
    %245 = arith.mulf %244, %243 : vector<8x1xf32>
    %246 = arith.addf %242, %245 : vector<8x1xf32>
    %247 = vector.broadcast %236 : vector<1x128xf32> to vector<8x128xf32>
    %248 = vector.broadcast %246 : vector<8x1xf32> to vector<8x128xf32>
    %249 = arith.minimumf %247, %248 : vector<8x128xf32>
    %250 = vector.broadcast %231 : vector<1x128xf32> to vector<8x128xf32>
    %251 = vector.broadcast %241 : vector<8x1xf32> to vector<8x128xf32>
    %252 = arith.maximumf %250, %251 : vector<8x128xf32>
    %253 = arith.subf %249, %252 : vector<8x128xf32>
    %cst_30 = arith.constant 0.000000e+00 : f32
    %254 = vector.broadcast %cst_30 : f32 to vector<8x128xf32>
    %255 = arith.maximumf %253, %254 : vector<8x128xf32>
    %256 = vector.broadcast %236 : vector<1x128xf32> to vector<8x128xf32>
    %257 = vector.broadcast %246 : vector<8x1xf32> to vector<8x128xf32>
    %258 = arith.maximumf %256, %257 : vector<8x128xf32>
    %259 = vector.broadcast %231 : vector<1x128xf32> to vector<8x128xf32>
    %260 = vector.broadcast %241 : vector<8x1xf32> to vector<8x128xf32>
    %261 = arith.minimumf %259, %260 : vector<8x128xf32>
    %262 = arith.subf %258, %261 : vector<8x128xf32>
    %263 = arith.mulf %225, %255 : vector<8x128xf32>
    %264 = arith.mulf %226, %262 : vector<8x128xf32>
    %265 = vector.broadcast %147 : vector<1x128xf32> to vector<8x128xf32>
    %266 = vector.broadcast %152 : vector<8x1xf32> to vector<8x128xf32>
    %267 = arith.addf %265, %266 : vector<8x128xf32>
    %268 = arith.subf %267, %263 : vector<8x128xf32>
    %cst_31 = arith.constant 9.99999993E-9 : f32
    %269 = vector.broadcast %cst_31 : f32 to vector<8x128xf32>
    %270 = arith.addf %268, %269 : vector<8x128xf32>
    %271 = tpu.reciprocal %270 {approx = true} : vector<8x128xf32> -> vector<8x128xf32>
    %cst_32 = arith.constant 9.99999993E-9 : f32
    %272 = vector.broadcast %cst_32 : f32 to vector<8x128xf32>
    %273 = arith.addf %264, %272 : vector<8x128xf32>
    %274 = tpu.reciprocal %273 {approx = true} : vector<8x128xf32> -> vector<8x128xf32>
    %275 = arith.mulf %263, %271 : vector<8x128xf32>
    %276 = arith.subf %264, %268 : vector<8x128xf32>
    %277 = arith.mulf %276, %274 : vector<8x128xf32>
    %278 = arith.subf %275, %277 : vector<8x128xf32>
    %cst_33 = arith.constant 1.000000e+00 : f32
    %279 = vector.broadcast %cst_33 : f32 to vector<8x128xf32>
    %280 = arith.mulf %279, %278 : vector<8x128xf32>
    %281 = arith.subf %142, %280 : vector<8x128xf32>
    %c0_34 = arith.constant 0 : index
    %c0_35 = arith.constant 0 : index
    %c0_36 = arith.constant 0 : index
    %282 = vector.load %arg7[%c0_34, %c0_35, %c0_36] : memref<1x8x128xf32, #tpu.memory_space<vmem>>, vector<1x8x128xf32>
    %283 = vector.shape_cast %282 : vector<1x8x128xf32> to vector<8x128xf32>
    %284 = vector.shape_cast %281 : vector<8x128xf32> to vector<1x8x128xf32>
    tpu.vector_store %arg7[%c0_34, %c0_35, %c0_36], %284 {strides = array<i32>} : memref<1x8x128xf32, #tpu.memory_space<vmem>>, vector<1x8x128xf32>,
    return
  }
  func.func @transform_0(%arg0: i32, %arg1: i32) -> (i32, i32, i32) {
    %c0_i32 = arith.constant 0 : i32
    %c0_i32_0 = arith.constant 0 : i32
    return %arg0, %c0_i32, %arg1 : i32, i32, i32
  }
  func.func @transform_1(%arg0: i32, %arg1: i32) -> (i32, i32, i32) {
    %c0_i32 = arith.constant 0 : i32
    %c0_i32_0 = arith.constant 0 : i32
    return %arg0, %c0_i32, %arg1 : i32, i32, i32
  }
  func.func @transform_2(%arg0: i32, %arg1: i32) -> (i32, i32, i32) {
    %c0_i32 = arith.constant 0 : i32
    %c0_i32_0 = arith.constant 0 : i32
    return %arg0, %c0_i32, %arg1 : i32, i32, i32
  }
  func.func @transform_3(%arg0: i32, %arg1: i32) -> (i32, i32, i32) {
    %c0_i32 = arith.constant 0 : i32
    %c0_i32_0 = arith.constant 0 : i32
    %c0_i32_1 = arith.constant 0 : i32
    return %arg0, %c0_i32, %c0_i32_0 : i32, i32, i32
  }
  func.func @transform_4(%arg0: i32, %arg1: i32) -> (i32, i32, i32) {
    %c0_i32 = arith.constant 0 : i32
    %c0_i32_0 = arith.constant 0 : i32
    %c0_i32_1 = arith.constant 0 : i32
    return %arg0, %c0_i32, %c0_i32_0 : i32, i32, i32
  }
  func.func @transform_5(%arg0: i32, %arg1: i32) -> (i32, i32, i32) {
    %c0_i32 = arith.constant 0 : i32
    %c0_i32_0 = arith.constant 0 : i32
    return %arg0, %c0_i32, %arg1 : i32, i32, i32
  }
}

</mosaic_0001>

<bundles_post_ra>
// kernel: tpu_custom_call.1
= control target key start
LH: loop header
LB: loop body
LE: loop exit
PB: predicated region body
PF: predicated region fallthrough
CT: control target
= control target key end

     0   :  { %10 = vsyncpa [#allocation3], 0  ;;  %s1301_s0 = inlined_call_operand.vmem [shape: f32[2,6,128], index: 0, kind: input, shape index: {}]   ;;  %s1302_s1 = inlined_call_operand.vmem [shape: f32[2,12,128], index: 1, kind: input, shape index: {}]   ;;  %s1303_s2 = inlined_call_operand.vmem [shape: f32[2,1,128], index: 2, kind: input, shape index: {}]   ;;  %s1304_s3 = inlined_call_operand.vmem [shape: f32[2,8,6], index: 3, kind: input, shape index: {}]   ;;  %s1305_s4 = inlined_call_operand.vmem [shape: f32[2,8,12], index: 4, kind: input, shape index: {}]   ;;  %s1306_s5 = inlined_call_operand.hbm [shape: f32[2,8,128], index: 5, kind: output, shape index: {}]  }
   0x1   :  { %12 = vsyncpa [#allocation3 + $0x1], 0  ;;  %s1049_s18 = smov 0   ;;  %s1051_s19 = smov 0  }
   0x2   :  { %s1053_s20 = smov 0   ;;  %s1055_s21 = smov 0  }
   0x3   :  { %s1057_s22 = smov 0   ;;  %s1059_s23 = smov 0  }
   0x4 LB: > { %s812_s24 = sadd.s32 4294967295, %s1001_s23   ;;  %s813_s25 = sadd.s32 4294967294, %s1001_s23   ;;  %s1001_s23 = sphi %s1059_s23, %s18_s23   ;;  %s997_s22 = sphi %s1057_s22, %s1313_s22   ;;  %s993_s21 = sphi %s1055_s21, %s1312_s21   ;;  %s989_s20 = sphi %s1053_s20, %s1311_s20   ;;  %s985_s19 = sphi %s1051_s19, %s1310_s19   ;;  %s981_s18 = sphi %s1049_s18, %s1309_s18  }
   0x5   : > { %s30_s26 = sadd.s32 1, %s997_s22  ;;  %s175_s27 = sadd.s32 1, %s989_s20 }
   0x6   : > { %p32_p0 = scmp.ge.s32.totalorder %s30_s26, 2  ;;  %p185_p1 = scmp.ne.s32.totalorder %s989_s20, %s985_s19 }
   0x7   : > { %p186_p2 = scmp.eq.s32.totalorder %s812_s24, 1  ;;  %p191_p3 = scmp.ne.s32.totalorder %s985_s19, %s981_s18 }
   0x8   : > { %s1315_s26 = smov (%p32_p0, %s30_s26), 0  ;;  %p192_p5 = scmp.eq.s32.totalorder %s813_s25, 1 }
   0x9   : > { %p1089_p4 = por %p186_p2, %p185_p1  ;;  %s170_s29 = ssub.s32 %s997_s22, %s1315_s26 }
   0xa   : > { %p816_p6 = scmp.ge.s32.totalorder %s1001_s23, 1  ;;  %p173_p7 = scmp.eq.s32.totalorder %s170_s29, 0 }
   0xb   : > { %p1096_p8 = por %p192_p5, %p191_p3  ;;  %p254_p9 = scmp.lt.s32.totalorder %s1001_s23, 3 }
   0xc   : > { %s1102_s6 = scalar_select %p173_p7, %s989_s20, %s175_s27  }
   0xd   : > { %p255_p10 = pnand %p816_p6, %p254_p9 }
   0xe   : > { %p306_p11 = scmp.lt.s32.totalorder (!%p255_p10), %s993_s21, 1  ;;  %s1005_s15 = smov (!%p255_p10), 126  }
   0xf   : > { %258 = sbr.rel (%p255_p10) target bundleno = 343 (0x157), region = 40  ;;  %s1006_s16 = smov (!%p255_p10), 125  }
  0x10   : > { %s1007_s17 = smov (!%p255_p10), 127   ;;  %s1018_s9 = smov (!%p255_p10), [#allocation2]  }
  0x14   : > { %v1003_v0 = vmov 1   ;;  %v1004_v1 = vmov 3   ;;  %s1107_s7 = scalar_select %p306_p11, %s993_s21, 1  ;;  %v1008_v5 = vmov 2   ;;  %v1009_v6 = vmov 4  }
  0x15   : > { %898 = vset.pattern.permute.xlu1 %v1003_v0  ;;  %900 = vset.pattern.permute.xlu0 %v1004_v1  ;;  %v1010_v7 = vmov 6   ;;  %v1011_v8 = vmov 5   ;;  %v1012_v9 = vmov 0   ;;  %v1013_v10 = vmov 7  }
  0x16   : > { %s1110_s8 = sshll.u32 %s1107_s7, 3  ;;  %v1014_v11 = vmov 8   ;;  %v1015_v15 = vmov 9   ;;  %v1016_v16 = vmov 11   ;;  %v1017_v21 = vmov 10   ;;  %s827_s29 = sshll.u32 %s1107_s7, 4 }
  0x17   : > { %s330_s11 = scalar_lea.vmem %s1304_s3, %s1110_s8  ;;  %s334_s14 = scalar_lea.vmem %s1305_s4, %s1110_s8  ;;  %v341_v32 = vlaneseq }
  0x18   : > { %v1120_v2 = vld [vmem:[%s330_s11] sm:$0xff]  ;;  %s312_s27 = scalar_lea.vmem %s1301_s0, %s1110_s8  ;;  %s1178_s10 = scalar_lea.vmem %s1302_s1, %s827_s29 }
  0x19   : > { %v569_v3 = vmul.f32 0.5, %v1120_v2  ;;  %559 = vrot.lane.b32.xlu1 %v1120_v2, %s1005_s15  ;;  %v340_v4 = vld [vmem:[%s334_s14] sm:$0xff]  ;;  %v1161_v36 = vshrl.u32 %v341_v32, 7  ;;  %s326_s13 = scalar_lea.vmem %s1303_s2, %s1107_s7  ;;  %s303_s7 = sand.u32 1, %s985_s19  }
  0x1a   : > { %v1156_v30 = vld [vmem:[%s312_s27] sm:$0x3f]  ;;  %s817_s14 = sshll.u32 %s303_s7, 3  ;;  %s824_s15 = sshll.u32 %s993_s21, 7 }
  0x1b   : > { %571 = vrot.lane.b32.xlu0 %v569_v3, %s1006_s16  ;;  %v563_v34 = vmul.f32 0.5, %v1156_v30  ;;  %v1165_v39 = vsub.s32 1, %v1161_v36  ;;  %v1172_v43 = vsub.s32 0, %v1161_v36  ;;  %v549_v46 = vrot.slane %v1156_v30, 1  ;;  %v338_v52 = vld [vmem:[%s1178_s10] sm:$0xff]  ;;  %s305_s16 = scalar_lea.vmem [#allocation2], %s817_s14  ;;  %s685_s27 = scalar_lea.hbm %s1306_s5, %s824_s15 }
  0x1c   : > { %v1185_v50 = vsub.s32 2, %v1161_v36  ;;  %v1191_v54 = vsub.s32 3, %v1161_v36  ;;  %v552_v62 = vrot.slane %v1156_v30, 2  ;;  %s673_s29 = scalar_lea.sflag [#allocation3], %s303_s7  ;;  %s929_s21 = sshll.u32 %s1018_s9, 4  ;;  %s930_s21 = int_to_ptr.vmem [resolvable:$false] %s929_s21 }
  0x1d   : > { %357 = vperm.xlu1 %898, %v340_v4   ;;  %v565_v37 = vrot.slane %v563_v34, 3  ;;  %v551_v57 = vmul.f32 %v549_v46, %v1156_v30  ;;  %v355_v63 = vrot.slane %v338_v52, %v1165_v39  ;;  %v344_v3 = vrot.slane %v338_v52, %v1172_v43 }
  0x1f   : > { %555 = vrot.lane.b32.xlu0 %v1120_v2, %s1007_s17  ;;  %v568_v40 = vadd.f32 %v565_v37, %v1156_v30  ;;  %v567_v41 = vsub.f32 %v1156_v30, %v565_v37  ;;  %s687_s17 = sshll.u32 %s305_s16, 4  ;;  %s688_s17 = int_to_ptr.vmem [resolvable:$true] %s687_s17 }
  0x20   : > { %s925_s8 = scalar_lea.vmem %s688_s17, 128  ;;  %p932_p1 = scmp.lt.s32.totalorder %s688_s17, %s930_s21 }
  0x21   : > { %899 = vset.pattern.permute.xlu1 %v1008_v5  ;;  %v613_v45 = vrot.slane %v567_v41, %v1165_v39  ;;  %v579_v47 = vrot.slane %v568_v40, %v1172_v43  ;;  %v589_v48 = vrot.slane %v567_v41, %v1172_v43  ;;  %v604_v49 = vrot.slane %v568_v40, %v1165_v39  ;;  %p926_p12 = scmp.ne.s32.totalorder %s688_s17, %s925_s8 }
  0x22   : > { %367 = vperm.xlu1 %899, %v340_v4   ;;  %v629_v55 = vrot.slane %v568_v40, %v1185_v50  ;;  %v638_v56 = vrot.slane %v567_v41, %v1185_v50 }
  0x23   : > { %378 = vperm.xlu0 %900, %v340_v4   ;;  %p927_p13 = pnand %p926_p12, %p1089_p4 }
  0x25   : > { %p928_p0 = pneg %p927_p13 }
  0x26   : > { %901 = vset.pattern.permute.xlu1 %v1009_v6 }
  0x27   : > { %389 = vperm.xlu1 %901, %v340_v4   ;;  %903 = vset.pattern.permute.xlu0 %v1010_v7 }
  0x28   : > { %411 = vperm.xlu0 %903, %v340_v4  }
  0x2b   : > { %902 = vset.pattern.permute.xlu1 %v1011_v8 }
  0x2c   : > { %400 = vperm.xlu1 %902, %v340_v4   ;;  %904 = vset.pattern.permute.xlu0 %v1012_v9 }
  0x2d   : > { %347 = vperm.xlu0 %904, %v340_v4  }
  0x30   : > { %905 = vset.pattern.permute.xlu1 %v1013_v10 }
  0x31   : > { %422 = vperm.xlu1 %905, %v340_v4  }
  0x35   : > { %906 = vset.pattern.permute.xlu1 %v1014_v11 }
  0x36   : > { %433 = vperm.xlu1 %906, %v340_v4  }
  0x3a   : > { %907 = vset.pattern.permute.xlu1 %v1012_v9 }
  0x8b   : > { %v560_v19 = vpop.permute.xlu1 %559 }
  0x8d   : > { %v572_v12 = vpop.permute.xlu0 %571 }
  0x8e   : > { %v574_v13 = vsub.f32 %v1120_v2, %v572_v12  ;;  %v575_v14 = vadd.f32 %v572_v12, %v1120_v2  ;;  %v376_v12 = vrot.slane %v338_v52, %v1191_v54 }
  0x90   : > { %582 = vperm.xlu1 %907, %v575_v14   ;;  %592 = vperm.xlu0 %904, %v574_v13  }
  0x91   : > { %v556_v17 = vpop.permute.xlu0 %555 }
  0x92   : > { %v558_v18 = vmul.f32 %v556_v17, %v1120_v2 }
  0x94   : > { %908 = vset.pattern.permute.xlu1 %v1003_v0  ;;  %909 = vset.pattern.permute.xlu0 %v1008_v5  ;;  %v562_v20 = vmul.f32 %v560_v19, %v558_v18 }
  0x95   : > { %606 = vperm.xlu1 %908, %v575_v14   ;;  %631 = vperm.xlu0 %909, %v575_v14  }
  0x98   : > { %v1136_v22 = vpop.permute.xlu1 %357 }
  0x99   : > { %615 = vperm.xlu1 %908, %v574_v13   ;;  %910 = vset.pattern.permute.xlu0 %v1015_v15  ;;  %v554_v15 = vmul.f32 %v552_v62, %v551_v57  ;;  %v360_v32 = vsub.f32 %v355_v63, %v1136_v22 }
  0x9a   : > { %444 = vperm.xlu0 %910, %v340_v4  }
  0x9b   : > { %v654_v46 = vrot.slane %v554_v15, %v1191_v54 }
  0x9d   : > { %911 = vset.pattern.permute.xlu1 %v1012_v9  ;;  %v1138_v23 = vpop.permute.xlu1 %367 }
  0x9e   : > { %479 = vperm.xlu1 %911, %v1120_v2   ;;  %913 = vset.pattern.permute.xlu0 %v1008_v5  ;;  %v1148_v28 = vpop.permute.xlu0 %378 }
  0x9f   : > { %499 = vperm.xlu0 %913, %v1120_v2   ;;  %v381_v40 = vsub.f32 %v376_v12, %v1148_v28  ;;  %v508_v12 = vrot.slane %v1156_v30, %v1191_v54 }
  0xa2   : > { %912 = vset.pattern.permute.xlu1 %v1003_v0  ;;  %v1140_v24 = vpop.permute.xlu1 %389  ;;  %v365_v0 = vrot.slane %v338_v52, %v1185_v50 }
  0xa3   : > { %489 = vperm.xlu1 %912, %v1120_v2   ;;  %917 = vset.pattern.permute.xlu0 %v1016_v16  ;;  %v1158_v33 = vpop.permute.xlu0 %411  ;;  %v408_v16 = vsub.s32 6, %v1161_v36 }
  0xa4   : > { %466 = vperm.xlu0 %917, %v340_v4  }
  0xa7   : > { %914 = vset.pattern.permute.xlu1 %v1008_v5  ;;  %v1142_v25 = vpop.permute.xlu1 %400 }
  0xa8   : > { %640 = vperm.xlu1 %914, %v574_v13   ;;  %920 = vset.pattern.permute.xlu0 %v1004_v1  ;;  %v348_v38 = vpop.permute.xlu0 %347  ;;  %v397_v13 = vsub.s32 5, %v1161_v36 }
  0xac   : > { %915 = vset.pattern.permute.xlu1 %v1004_v1  ;;  %v1144_v26 = vpop.permute.xlu1 %422  ;;  %v386_v1 = vsub.s32 4, %v1161_v36 }
  0xad   : > { %510 = vperm.xlu1 %915, %v1120_v2  }
  0xb1   : > { %657 = vperm.xlu1 %915, %v562_v20   ;;  %v1146_v27 = vpop.permute.xlu1 %433  ;;  %v370_v20 = vsub.f32 %v365_v0, %v1138_v23  ;;  %v398_v23 = vrot.slane %v338_v52, %v397_v13 }
  0xb3   : > { %v403_v62 = vsub.f32 %v398_v23, %v1142_v25  ;;  %v497_v25 = vrot.slane %v1156_v30, %v1185_v50 }
  0xb5   : > { %916 = vset.pattern.permute.xlu1 %v1017_v21  ;;  %v387_v21 = vrot.slane %v338_v52, %v386_v1 }
  0xb6   : > { %455 = vperm.xlu1 %916, %v340_v4  }
  0xb7   : > { %v392_v22 = vsub.f32 %v387_v21, %v1140_v24 }
  0xba   : > { %918 = vset.pattern.permute.xlu1 %v1009_v6 }
  0xbb   : > { %521 = vperm.xlu1 %918, %v1120_v2  }
  0xbf   : > { %919 = vset.pattern.permute.xlu1 %v1011_v8 }
  0xc0   : > { %532 = vperm.xlu1 %919, %v1120_v2  }
 0x10b   : > { %v1150_v29 = vpop.permute.xlu1 %582  ;;  %v593_v44 = vpop.permute.xlu0 %592 }
 0x10c   : > { %v585_v58 = vmin.f32 %v579_v47, %v1150_v29  ;;  %v595_v59 = vmax.f32 %v589_v48, %v593_v44  ;;  %v598_v4 = vmax.f32 %v579_v47, %v1150_v29  ;;  %v599_v5 = vmin.f32 %v589_v48, %v593_v44 }
 0x10d   : > { %v350_v29 = vsub.f32 %v344_v3, %v348_v38  ;;  %v409_v47 = vrot.slane %v338_v52, %v408_v16  ;;  %v419_v38 = vsub.s32 7, %v1161_v36 }
 0x10e   : > { %v596_v14 = vsub.f32 %v585_v58, %v595_v59  ;;  %v600_v34 = vsub.f32 %v598_v4, %v599_v5  ;;  %v361_v58 = vand.u32 2147483647, %v360_v32  ;;  %v382_v59 = vand.u32 2147483647, %v381_v40 }
 0x10f   : > { %v414_v63 = vsub.f32 %v409_v47, %v1158_v33  ;;  %v420_v0 = vrot.slane %v338_v52, %v419_v38 }
 0x110   : > { %v607_v31 = vpop.permute.xlu1 %606  ;;  %v632_v61 = vpop.permute.xlu0 %631  ;;  %v597_v41 = vmax.f32 %v596_v14, 0.0 }
 0x111   : > { %v609_v60 = vmin.f32 %v604_v49, %v607_v31  ;;  %v621_v8 = vmax.f32 %v604_v49, %v607_v31  ;;  %v634_v9 = vmin.f32 %v629_v55, %v632_v61  ;;  %v646_v17 = vmax.f32 %v629_v55, %v632_v61 }
 0x112   : > { %v371_v49 = vand.u32 2147483647, %v370_v20  ;;  %v425_v15 = vsub.f32 %v420_v0, %v1144_v26  ;;  %v519_v20 = vrot.slane %v1156_v30, %v386_v1 }
 0x114   : > { %v616_v35 = vpop.permute.xlu1 %615 }
 0x115   : > { %v618_v53 = vmax.f32 %v613_v45, %v616_v35  ;;  %v622_v2 = vmin.f32 %v613_v45, %v616_v35  ;;  %v445_v44 = vpop.permute.xlu0 %444 }
 0x117   : > { %v619_v6 = vsub.f32 %v609_v60, %v618_v53  ;;  %v623_v18 = vsub.f32 %v621_v8, %v622_v2  ;;  %v351_v53 = vand.u32 2147483647, %v350_v29  ;;  %v393_v2 = vand.u32 2147483647, %v392_v22 }
 0x118   : > { %v383_v8 = vadd.f32 %v382_v59, %v361_v58 }
 0x119   : > { %v1169_v42 = vpop.permute.xlu1 %479  ;;  %v620_v31 = vmax.f32 %v619_v6, 0.0  ;;  %v625_v48 = vmul.f32 %v623_v18, %v600_v34  ;;  %v372_v3 = vadd.f32 %v371_v49, %v351_v53  ;;  %v487_v18 = vrot.slane %v1156_v30, %v1165_v39 }
 0x11a   : > { %v500_v4 = vpop.permute.xlu0 %499 }
 0x11b   : > { %v624_v55 = vmul.f32 %v620_v31, %v597_v41  ;;  %v394_v16 = vadd.f32 %v393_v2, %v372_v3  ;;  %v502_v31 = vsub.f32 %v497_v25, %v500_v4 }
 0x11e   : > { %v1187_v51 = vpop.permute.xlu1 %489 }
 0x11f   : > { %v467_v29 = vpop.permute.xlu0 %466  ;;  %v492_v40 = vsub.f32 %v487_v18, %v1187_v51 }
 0x121   : > { %v493_v22 = vand.u32 2147483647, %v492_v40 }
 0x123   : > { %v641_v7 = vpop.permute.xlu1 %640 }
 0x124   : > { %v643_v10 = vmax.f32 %v638_v56, %v641_v7  ;;  %v647_v11 = vmin.f32 %v638_v56, %v641_v7  ;;  %v339_v56 = vld [vmem:[%s1178_s10 + $0x8] sm:$0xf]  ;;  %s931_s10 = scalar_lea.vmem %s930_s21, 256 }
 0x125   : > { %v431_v24 = vrot.slane %v339_v56, %v1172_v43  ;;  %v442_v6 = vrot.slane %v339_v56, %v1165_v39  ;;  %v453_v14 = vrot.slane %v339_v56, %v1185_v50  ;;  %v426_v39 = vand.u32 2147483647, %v425_v15  ;;  %p933_p2 = scmp.lt.s32.totalorder %s931_s10, %s925_s8 }
 0x126   : > { %v644_v19 = vsub.f32 %v634_v9, %v643_v10  ;;  %v648_v35 = vsub.f32 %v646_v17, %v647_v11  ;;  %v476_v9 = vrot.slane %v1156_v30, %v1172_v43  ;;  %v404_v10 = vand.u32 2147483647, %v403_v62 }
 0x127   : > { %v415_v11 = vand.u32 2147483647, %v414_v63  ;;  %v436_v17 = vsub.f32 %v431_v24, %v1146_v27  ;;  %v447_v21 = vsub.f32 %v442_v6, %v445_v44  ;;  %p934_p3 = por %p933_p2, %p932_p1 }
 0x128   : > { %v511_v37 = vpop.permute.xlu1 %510  ;;  %v645_v45 = vmax.f32 %v644_v19, 0.0  ;;  %v1217_v57 = vmul.f32 %v648_v35, %v625_v48  ;;  %v464_v19 = vrot.slane %v339_v56, %v1191_v54  ;;  %v482_v50 = vsub.f32 %v476_v9, %v1169_v42 }
 0x129   : > { %v513_v26 = vsub.f32 %v508_v12, %v511_v37  ;;  %v405_v27 = vadd.f32 %v404_v10, %v383_v8  ;;  %v416_v54 = vadd.f32 %v415_v11, %v394_v16  ;;  %v437_v35 = vand.u32 2147483647, %v436_v17  ;;  %p935_p5 = pnand %p934_p3, %p928_p0 }
 0x12a   : > { %v1219_v60 = vmul.f32 %v645_v45, %v624_v55  ;;  %v664_v7 = vadd.f32 1e-08, %v1217_v57  ;;  %v469_v1 = vsub.f32 %v464_v19, %v467_v29  ;;  %v530_v42 = vrot.slane %v1156_v30, %v397_v13  ;;  %v336_v45 = vld [vmem:[%s326_s13] sm:$0x1] }
 0x12b   : > { %v448_v37 = vand.u32 2147483647, %v447_v21  ;;  %v483_v44 = vand.u32 2147483647, %v482_v50  ;;  %v514_v23 = vand.u32 2147483647, %v513_v26  ;;  %v427_v38 = vadd.f32 %v426_v39, %v405_v27 }
 0x12c   : > { %v658_v28 = vpop.permute.xlu1 %657  ;;  %v438_v48 = vadd.f32 %v437_v35, %v416_v54  ;;  %v470_v53 = vand.u32 2147483647, %v469_v1 }
 0x12d   : > { %v660_v61 = vadd.f32 %v658_v28, %v654_v46  ;;  %v503_v46 = vand.u32 2147483647, %v502_v31  ;;  %v449_v56 = vadd.f32 %v448_v37, %v427_v38  ;;  %v540_v28 = vmul.f32 -1.0, %v336_v45 }
 0x12e   : > { %v515_v58 = vadd.f32 %v514_v23, %v493_v22 }
 0x12f   : > { %v1225_v5 = vsub.f32 %v660_v61, %v1219_v60  ;;  %v504_v36 = vadd.f32 %v503_v46, %v483_v44  ;;  %v471_v61 = vadd.f32 %v470_v53, %v449_v56  ;;  %v545_v2 = vrot.slane %v540_v28, %v1172_v43 }
 0x131   : > { %v662_v33 = vadd.f32 1e-08, %v1225_v5  ;;  %v456_v52 = vpop.permute.xlu1 %455  ;;  %v667_v24 = vsub.f32 %v1217_v57, %v1225_v5 }
 0x132   : > { %v458_v32 = vsub.f32 %v453_v14, %v456_v52 }
 0x133   : > { %921 = vrcp.f32 %v662_v33 }
 0x134   : > { %923 = vrcp.f32 %v664_v7  ;;  %v459_v47 = vand.u32 2147483647, %v458_v32 }
 0x136   : > { %v522_v34 = vpop.permute.xlu1 %521  ;;  %v460_v30 = vadd.f32 %v459_v47, %v438_v48 }
 0x137   : > { %v524_v41 = vsub.f32 %v519_v20, %v522_v34 }
 0x138   : > { %v472_v4 = vadd.f32 %v471_v61, %v460_v30 }
 0x139   : > { %v525_v51 = vand.u32 2147483647, %v524_v41 }
 0x13b   : > { %v533_v49 = vpop.permute.xlu1 %532  ;;  %v526_v62 = vadd.f32 %v525_v51, %v504_v36 }
 0x13c   : > { %v535_v55 = vsub.f32 %v530_v42, %v533_v49 }
 0x13e   : > { %v536_v13 = vand.u32 2147483647, %v535_v55 }
 0x140   : > { %v922_v59 = vpop.eup %921  ;;  %v537_v63 = vadd.f32 %v536_v13, %v515_v58 }
 0x141   : > { %v924_v0 = vpop.eup %923  ;;  %v666_v3 = vmul.f32 %v922_v59, %v1219_v60 }
 0x142   : > { %v538_v6 = vadd.f32 %v537_v63, %v526_v62  ;;  %v668_v7 = vmul.f32 %v924_v0, %v667_v24 }
 0x144   : > { %v539_v8 = vadd.f32 %v538_v6, %v472_v4  ;;  %v669_v25 = vsub.f32 %v666_v3, %v668_v7 }
 0x146   : > { %v547_v9 = vadd.f32 %v545_v2, %v539_v8 }
 0x148   : > { %v670_v33 = vsub.f32 %v547_v9, %v669_v25 }
 0x14a   : > { %671 = vst [vmem:[%s305_s16] sm:$0xff] %v670_v33 }
 0x14b   : > { %938 = shalt.err (!%p935_p5)
}
 0x14c   : > { %s939_s11 = scalar_lea.hbm %s685_s27, 128  ;;  %s943_s7 = scalar_lea.hbm %s1306_s5, 256 }
 0x14d   : > { %p940_p6 = scmp.ne.s32.totalorder %s685_s27, %s939_s11  ;;  %p944_p10 = scmp.lt.s32.totalorder %s685_s27, %s1306_s5 }
 0x14e   : > { %p945_p11 = scmp.lt.s32.totalorder %s943_s7, %s939_s11 }
 0x14f   : > { %p941_p7 = pnand %p940_p6, %p1089_p4 }
 0x150   : > { %p946_p12 = por %p945_p11, %p944_p10 }
 0x151   : > { %p942_p9 = pneg %p941_p7 }
 0x153   : > { %p947_p13 = pnand %p946_p12, %p942_p9 }
 0x155   : > { %950 = shalt.err (!%p947_p13)
}
 0x156   : > { %828 = dma.vmem_to_hbm [thread:$0]  (%p1089_p4), %s688_s17, 128, %s685_s27, %s673_s29  }
 0x157 PF: > { %p834_p0 = scmp.ge.s32.totalorder %s1001_s23, 2  ;;  %s699_s16 = sand.u32 1, %s981_s18  }
 0x158   : > { %s700_s24 = scalar_lea.sflag [#allocation3], %s699_s16 }
 0x159   : > { %p831_p1 = pnand %p834_p0, %p1096_p8 }
 0x15b   : > { %p832_p2 = pneg %p831_p1 }
 0x15d   : > { %976 = dma.done.wait (%p832_p2), %s700_s24, 128  }
 0x15e   : > { %978 = vsyncadd (%p832_p2), %s700_s24, 4294967168  ;;  %s18_s23 = sadd.s32 1, %s1001_s23   ;;  %s1309_s18 = smov %s985_s19 }
 0x15f   : > { %p15_p3 = scmp.ge.s32.totalorder %s18_s23, 4   ;;  %s1310_s19 = smov %s989_s20 }
 0x160   : > { %s1311_s20 = smov %s1102_s6  ;;  %s1312_s21 = smov %s997_s22 }
 0x161   : > { %s1313_s22 = smov %s1315_s26  ;;  %17 = sbr.rel (!%p15_p3) target bundleno = 4 (0x4), region = 87 }
 0x166   :  { %705 = vsyncpa [#allocation3], 1 }
 0x167   :  { %707 = vsyncpa [#allocation3 + $0x1], 1 }

</bundles_post_ra>
